<compile_context>
chip_gen: v7x
topology: tpu7x:2x2x1
jax: 0.10.0
libtpu: 0.0.40
codegen_flags: <defaults>
</compile_context>

<pallas_src>
import jax
import jax.numpy as jnp
from jax import lax
from jax.experimental import pallas as pl
from jax.experimental.pallas import tpu as pltpu

SELU_ALPHA = 1.6732632423543772
SELU_SCALE = 1.0507009873554805
BN_EPS = 1e-5
KSIZE = 5
PAD = 2
LANE = 128


def _act_bn_kernel(x_ref, scale_ref, shift_ref, o_ref):
    """selu + eval-mode BatchNorm applied ONCE per pixel (compact layout).

    x_ref:     (br, HW) f32; rows are (batch, channel) pairs, lanes are pixels.
    scale_ref: (br, 1)  f32 per-row BN scale  (gamma / sqrt(var + eps))
    shift_ref: (br, 1)  f32 per-row BN shift  (beta - mean * scale)
    o_ref:     (br, HW) bf16 activated output (streamed onward as bf16).
    """
    x = x_ref[...]
    act = SELU_SCALE * jnp.where(x > 0, x, SELU_ALPHA * (jnp.exp(x) - 1.0))
    o_ref[...] = (act * scale_ref[...] + shift_ref[...]).astype(o_ref.dtype)


def _conv_kernel(p_ref, w_ref, b_ref, o_ref):
    """5x5 conv as a single lane-dense MXU matmul over pre-activated patches.

    p_ref: (bm, Kp)  bf16 im2col patches (K = 25*Cin zero-padded to Kp lanes)
    w_ref: (Kp, Np)  bf16 weight matrix (K and Cout zero-padded)
    b_ref: (1, Np)   f32 conv bias (zero-padded)
    o_ref: (bm, Np)  f32 output rows (lane-dense; sliced to Cout on the host)
    """
    o_ref[...] = (
        jnp.dot(p_ref[...], w_ref[...], preferred_element_type=jnp.float32)
        + b_ref[...]
    )


def _im2col_nhwc(img, H, W):
    """img: (B, H+4, W+4, C) -> (B*H*W, 25*C); column order (dy, dx, c)."""
    slabs = [img[:, dy:dy + H, dx:dx + W, :]
             for dy in range(KSIZE) for dx in range(KSIZE)]
    cols = jnp.stack(slabs, axis=3)          # (B, H, W, 25, C)
    B, C = img.shape[0], img.shape[3]
    return cols.reshape(B * H * W, KSIZE * KSIZE * C)


def _round_up(x, m):
    return pl.cdiv(x, m) * m


def outclass_forward(x1, x2, conv_w, conv_b, bn_gamma, bn_beta, bn_mean, bn_var):
    """x1: (B, Cin, H, W); x2 unused (torch `.add` result is discarded)."""
    del x2
    B, Cin, H, W = x1.shape
    Cout = conv_w.shape[0]
    HW = H * W
    K = KSIZE * KSIZE * Cin
    K_pad = _round_up(K, LANE)
    N_pad = _round_up(Cout, LANE)
    M = B * H * W

    # ---- Stage 1: selu + BN once per pixel (Pallas), bf16 out ---------------
    rows = B * Cin
    x_flat = x1.reshape(rows, HW).astype(jnp.float32)
    bn_scale = bn_gamma * lax.rsqrt(bn_var + BN_EPS)
    bn_shift = bn_beta - bn_mean * bn_scale
    scale_col = jnp.tile(bn_scale, B).reshape(rows, 1).astype(jnp.float32)
    shift_col = jnp.tile(bn_shift, B).reshape(rows, 1).astype(jnp.float32)

    br = min(rows, 1024)
    rows_pad = _round_up(rows, br)
    if rows_pad != rows:
        x_flat = jnp.pad(x_flat, ((0, rows_pad - rows), (0, 0)))
        scale_col = jnp.pad(scale_col, ((0, rows_pad - rows), (0, 0)))
        shift_col = jnp.pad(shift_col, ((0, rows_pad - rows), (0, 0)))

    act_flat = pl.pallas_call(
        _act_bn_kernel,
        out_shape=jax.ShapeDtypeStruct((rows_pad, HW), jnp.bfloat16),
        grid_spec=pltpu.PrefetchScalarGridSpec(
            num_scalar_prefetch=0,
            grid=(rows_pad // br,),
            in_specs=[
                pl.BlockSpec((br, HW), lambda i: (i, 0)),
                pl.BlockSpec((br, 1), lambda i: (i, 0)),
                pl.BlockSpec((br, 1), lambda i: (i, 0)),
            ],
            out_specs=pl.BlockSpec((br, HW), lambda i: (i, 0)),
        ),
        compiler_params=pltpu.CompilerParams(
            dimension_semantics=("parallel",)),
    )(x_flat, scale_col, shift_col)[:rows]

    # ---- host layout plumbing (no arithmetic): NHWC, zero-pad, im2col -------
    act_nhwc = act_flat.reshape(B, Cin, H, W).transpose(0, 2, 3, 1)
    act_padded = jnp.pad(act_nhwc, ((0, 0), (PAD, PAD), (PAD, PAD), (0, 0)))
    patches = _im2col_nhwc(act_padded, H, W)                     # (M, K) bf16

    # Block size: big blocks for the HBM roofline, but keep >=2 blocks for the
    # two v7x TensorCores when M is small; blocks stay far under scoped VMEM.
    bm = 2048
    while bm > 128 and M <= bm:
        bm //= 2
    M_pad = _round_up(M, bm)
    patches = jnp.pad(patches, ((0, M_pad - M), (0, K_pad - K)))

    # Conv weight (Cout, Cin, 5, 5) -> (K_pad, N_pad) bf16, rows ordered (dy, dx, ic).
    w_mat = conv_w.transpose(2, 3, 1, 0).reshape(K, Cout)
    w_mat = jnp.pad(w_mat, ((0, K_pad - K), (0, N_pad - Cout))).astype(jnp.bfloat16)
    bias_row = jnp.pad(conv_b.astype(jnp.float32),
                       (0, N_pad - Cout)).reshape(1, N_pad)

    # ---- Stage 2: single lane-dense matmul + bias (Pallas) ------------------
    out_flat = pl.pallas_call(
        _conv_kernel,
        out_shape=jax.ShapeDtypeStruct((M_pad, N_pad), jnp.float32),
        grid_spec=pltpu.PrefetchScalarGridSpec(
            num_scalar_prefetch=0,
            grid=(M_pad // bm,),
            in_specs=[
                pl.BlockSpec((bm, K_pad), lambda i: (i, 0)),     # patches (bf16)
                pl.BlockSpec((K_pad, N_pad), lambda i: (0, 0)),  # weight  (bf16)
                pl.BlockSpec((1, N_pad), lambda i: (0, 0)),      # bias    (f32)
            ],
            out_specs=pl.BlockSpec((bm, N_pad), lambda i: (i, 0)),
        ),
        compiler_params=pltpu.CompilerParams(
            dimension_semantics=("parallel",)),
    )(patches, w_mat, bias_row)

    # (M_pad, N_pad) -> (B, Cout, H, W)
    out = out_flat[:M, :Cout].reshape(B, H, W, Cout).transpose(0, 3, 1, 2)
    return out.astype(x1.dtype)


if __name__ == "__main__":
    B, Cin, H, W = 2, 4, 16, 16
    Cout = 8

    key = jax.random.PRNGKey(0)
    kx1, kx2, kw, kb, kg, kbt, km, kv = jax.random.split(key, 8)

    x1 = jax.random.normal(kx1, (B, Cin, H, W), dtype=jnp.float32)
    x2 = jax.random.normal(kx2, (B, Cout, H, W), dtype=jnp.float32)

    fan_in = Cin * KSIZE * KSIZE
    bound = 1.0 / jnp.sqrt(jnp.float32(fan_in))
    conv_w = jax.random.uniform(kw, (Cout, Cin, KSIZE, KSIZE), jnp.float32,
                                -bound, bound)
    conv_b = jax.random.uniform(kb, (Cout,), jnp.float32, -bound, bound)

    bn_gamma = jax.random.uniform(kg, (Cin,), jnp.float32, 0.5, 1.5)
    bn_beta = 0.1 * jax.random.normal(kbt, (Cin,), jnp.float32)
    bn_mean = 0.1 * jax.random.normal(km, (Cin,), jnp.float32)
    bn_var = jax.random.uniform(kv, (Cin,), jnp.float32, 0.5, 1.5)

    fwd = jax.jit(outclass_forward)
    y = jax.block_until_ready(
        fwd(x1, x2, conv_w, conv_b, bn_gamma, bn_beta, bn_mean, bn_var))

    # ---- plain-JAX reference (selu -> eval BN -> conv; bf16 operands with
    #      f32 accumulation, matching the kernel's MXU path) ------------------
    act = SELU_SCALE * jnp.where(x1 > 0, x1, SELU_ALPHA * (jnp.exp(x1) - 1.0))
    bsc = (bn_gamma * lax.rsqrt(bn_var + BN_EPS))[None, :, None, None]
    bsh = (bn_beta - bn_mean * bn_gamma * lax.rsqrt(bn_var + BN_EPS))[None, :, None, None]
    act_bn = act * bsc + bsh
    y_ref = lax.conv_general_dilated(
        act_bn.astype(jnp.bfloat16), conv_w.astype(jnp.bfloat16),
        window_strides=(1, 1), padding=((PAD, PAD), (PAD, PAD)),
        dimension_numbers=("NCHW", "OIHW", "NCHW"),
        preferred_element_type=jnp.float32,
    ) + conv_b[None, :, None, None]

    assert y.shape == (B, Cout, H, W), y.shape
    max_err = float(jnp.max(jnp.abs(y - y_ref)))
    assert jnp.allclose(y, y_ref, atol=2e-3, rtol=2e-3), max_err

    print("KERNEL_OK")
</pallas_src>

<mosaic_0001>
module attributes {stable_mosaic.version = 11 : i64} {
  func.func @_act_bn_kernel(%arg0: i32, %arg1: memref<8x256xf32, #tpu.memory_space<vmem>>, %arg2: memref<8x1xf32, #tpu.memory_space<vmem>>, %arg3: memref<8x1xf32, #tpu.memory_space<vmem>>, %arg4: memref<8x256xbf16, #tpu.memory_space<vmem>>) attributes {dimension_semantics = [#tpu.dimension_semantics<parallel>], iteration_bounds = array<i64: 1>, scalar_prefetch = 0 : i64, scratch_operands = 0 : i64, tpu.core_type = #tpu.core_type<tc>, window_params = [{transform_indices = @transform_0, window_bounds = array<i64: 8, 256>}, {transform_indices = @transform_1, window_bounds = array<i64: 8, 1>}, {transform_indices = @transform_2, window_bounds = array<i64: 8, 1>}, {transform_indices = @transform_3, window_bounds = array<i64: 8, 256>}]} {
    %c0 = arith.constant 0 : index
    %c0_0 = arith.constant 0 : index
    %0 = vector.load %arg1[%c0, %c0_0] : memref<8x256xf32, #tpu.memory_space<vmem>>, vector<8x256xf32>
    %cst = arith.constant 0.000000e+00 : f32
    %1 = vector.broadcast %cst : f32 to vector<8x256xf32>
    %2 = arith.cmpf ogt, %0, %1 : vector<8x256xf32>
    %3 = math.exp %0 : vector<8x256xf32>
    %cst_1 = arith.constant 1.000000e+00 : f32
    %4 = vector.broadcast %cst_1 : f32 to vector<8x256xf32>
    %5 = arith.subf %3, %4 : vector<8x256xf32>
    %cst_2 = arith.constant 1.67326319 : f32
    %6 = vector.broadcast %cst_2 : f32 to vector<8x256xf32>
    %7 = arith.mulf %6, %5 : vector<8x256xf32>
    %8 = arith.select %2, %0, %7 : vector<8x256xi1>, vector<8x256xf32>
    %cst_3 = arith.constant 1.05070102 : f32
    %9 = vector.broadcast %cst_3 : f32 to vector<8x256xf32>
    %10 = arith.mulf %9, %8 : vector<8x256xf32>
    %c0_4 = arith.constant 0 : index
    %c0_5 = arith.constant 0 : index
    %11 = vector.load %arg2[%c0_4, %c0_5] : memref<8x1xf32, #tpu.memory_space<vmem>>, vector<8x1xf32>
    %12 = vector.broadcast %11 : vector<8x1xf32> to vector<8x256xf32>
    %13 = arith.mulf %10, %12 : vector<8x256xf32>
    %c0_6 = arith.constant 0 : index
    %c0_7 = arith.constant 0 : index
    %14 = vector.load %arg3[%c0_6, %c0_7] : memref<8x1xf32, #tpu.memory_space<vmem>>, vector<8x1xf32>
    %15 = vector.broadcast %14 : vector<8x1xf32> to vector<8x256xf32>
    %16 = arith.addf %13, %15 : vector<8x256xf32>
    %17 = arith.truncf %16 : vector<8x256xf32> to vector<8x256xbf16>
    %c0_8 = arith.constant 0 : index
    %c0_9 = arith.constant 0 : index
    %18 = vector.load %arg4[%c0_8, %c0_9] : memref<8x256xbf16, #tpu.memory_space<vmem>>, vector<8x256xbf16>
    tpu.vector_store %arg4[%c0_8, %c0_9], %17 {strides = array<i32>} : memref<8x256xbf16, #tpu.memory_space<vmem>>, vector<8x256xbf16>,
    return
  }
  func.func @transform_0(%arg0: i32) -> (i32, i32) {
    %c0_i32 = arith.constant 0 : i32
    %c0_i32_0 = arith.constant 0 : i32
    return %arg0, %c0_i32 : i32, i32
  }
  func.func @transform_1(%arg0: i32) -> (i32, i32) {
    %c0_i32 = arith.constant 0 : i32
    %c0_i32_0 = arith.constant 0 : i32
    return %arg0, %c0_i32 : i32, i32
  }
  func.func @transform_2(%arg0: i32) -> (i32, i32) {
    %c0_i32 = arith.constant 0 : i32
    %c0_i32_0 = arith.constant 0 : i32
    return %arg0, %c0_i32 : i32, i32
  }
  func.func @transform_3(%arg0: i32) -> (i32, i32) {
    %c0_i32 = arith.constant 0 : i32
    %c0_i32_0 = arith.constant 0 : i32
    return %arg0, %c0_i32 : i32, i32
  }
}

module attributes {stable_mosaic.version = 11 : i64} {
  func.func @_conv_kernel(%arg0: i32, %arg1: memref<256x128xbf16, #tpu.memory_space<vmem>>, %arg2: memref<128x128xbf16, #tpu.memory_space<vmem>>, %arg3: memref<1x128xf32, #tpu.memory_space<vmem>>, %arg4: memref<256x128xf32, #tpu.memory_space<vmem>>) attributes {dimension_semantics = [#tpu.dimension_semantics<parallel>], iteration_bounds = array<i64: 2>, scalar_prefetch = 0 : i64, scratch_operands = 0 : i64, tpu.core_type = #tpu.core_type<tc>, window_params = [{transform_indices = @transform_0, window_bounds = array<i64: 256, 128>}, {pipeline_mode = #tpu.pipeline_mode<synchronous>, transform_indices = @transform_1, window_bounds = array<i64: 128, 128>}, {pipeline_mode = #tpu.pipeline_mode<synchronous>, transform_indices = @transform_2, window_bounds = array<i64: 1, 128>}, {transform_indices = @transform_3, window_bounds = array<i64: 256, 128>}]} {
    %c0 = arith.constant 0 : index
    %c0_0 = arith.constant 0 : index
    %0 = vector.load %arg1[%c0, %c0_0] : memref<256x128xbf16, #tpu.memory_space<vmem>>, vector<256x128xbf16>
    %c0_1 = arith.constant 0 : index
    %c0_2 = arith.constant 0 : index
    %1 = vector.load %arg2[%c0_1, %c0_2] : memref<128x128xbf16, #tpu.memory_space<vmem>>, vector<128x128xbf16>
    %cst = arith.constant dense<0.000000e+00> : vector<256x128xf32>
    %2 = tpu.matmul %0, %1, %cst {dimension_numbers = #tpu.dot_dimension_numbers<[1], [0], [0], [1], [0, 0, 1, 1], [], []>} : vector<256x128xbf16>, vector<128x128xbf16>, vector<256x128xf32> -> vector<256x128xf32>
    %c0_3 = arith.constant 0 : index
    %c0_4 = arith.constant 0 : index
    %3 = vector.load %arg3[%c0_3, %c0_4] : memref<1x128xf32, #tpu.memory_space<vmem>>, vector<1x128xf32>
    %4 = vector.broadcast %3 : vector<1x128xf32> to vector<256x128xf32>
    %5 = arith.addf %2, %4 : vector<256x128xf32>
    %c0_5 = arith.constant 0 : index
    %c0_6 = arith.constant 0 : index
    %6 = vector.load %arg4[%c0_5, %c0_6] : memref<256x128xf32, #tpu.memory_space<vmem>>, vector<256x128xf32>
    tpu.vector_store %arg4[%c0_5, %c0_6], %5 {strides = array<i32>} : memref<256x128xf32, #tpu.memory_space<vmem>>, vector<256x128xf32>,
    return
  }
  func.func @transform_0(%arg0: i32) -> (i32, i32) {
    %c0_i32 = arith.constant 0 : i32
    %c0_i32_0 = arith.constant 0 : i32
    return %arg0, %c0_i32 : i32, i32
  }
  func.func @transform_1(%arg0: i32) -> (i32, i32) {
    %c0_i32 = arith.constant 0 : i32
    %c0_i32_0 = arith.constant 0 : i32
    %c0_i32_1 = arith.constant 0 : i32
    return %c0_i32, %c0_i32_0 : i32, i32
  }
  func.func @transform_2(%arg0: i32) -> (i32, i32) {
    %c0_i32 = arith.constant 0 : i32
    %c0_i32_0 = arith.constant 0 : i32
    %c0_i32_1 = arith.constant 0 : i32
    return %c0_i32, %c0_i32_0 : i32, i32
  }
  func.func @transform_3(%arg0: i32) -> (i32, i32) {
    %c0_i32 = arith.constant 0 : i32
    %c0_i32_0 = arith.constant 0 : i32
    return %arg0, %c0_i32 : i32, i32
  }
}

</mosaic_0001>

<bundles_post_ra>
// kernel: tile.13
= control target key start
LH: loop header
LB: loop body
LE: loop exit
PB: predicated region body
PF: predicated region fallthrough
CT: control target
= control target key end

     0   :  { %s22_s0 = inlined_call_operand.vmem [shape: f32[4], index: 0, kind: input, shape index: {}]   ;;  %s23_s1 = inlined_call_operand.vmem [shape: f32[2,4], index: 1, kind: output, shape index: {}]  }
   0x1   :  { %v4_v0 = vld [vmem:[%s22_s0] ss:$0 sm:$0xff] }
   0x2   :  { %5 = vst [vmem:[%s23_s1] sm:$0x3] %v4_v0 }

// kernel: tile.0
= control target key start
LH: loop header
LB: loop body
LE: loop exit
PB: predicated region body
PF: predicated region fallthrough
CT: control target
= control target key end

     0   :  { %s34_s8 = smov 125   ;;  %vm7_vm0 = vcmask 7168   ;;  %s35_s11 = smov 126   ;;  %s61_s0 = inlined_call_operand.vmem [shape: f32[2,4], index: 0, kind: input, shape index: {}]   ;;  %s62_s1 = inlined_call_operand.vmem [shape: f32[8,1], index: 1, kind: output, shape index: {}]  }
   0x1   :  { %v4_v0 = vld [vmem:[%s61_s0] sm:$0x3]  ;;  %s33_s0 = smov 127  }
   0x2   :  { %5 = vst [vmem:[#allocation0] sm:$0x3] %v4_v0 }
   0x9   :  { %v9_v1 = vld [vmem:[#allocation0] sm:$0x3]  }
   0xa   :  { %v21_v2 = vld [vmem:[#allocation0] sm:$0x3]   ;;  %10 = vrot.lane.b32.xlu0 %v9_v1, %s33_s0 }
   0xb   :  { %22 = vrot.lane.b32.xlu1 %v21_v2, %s34_s8  ;;  %v6_v3 = vld [vmem:[#allocation0] sm:$0x3]  }
   0xc   :  { %v15_v4 = vld [vmem:[#allocation0] sm:$0x3]   ;;  %8 = vst.msk [vmem:[%s62_s1] ss:$4 sm:$0x3] %vm7_vm0, %v6_v3  }
   0xe   :  { %16 = vrot.lane.b32.xlu0 %v15_v4, %s35_s11 }
  0x7c   :  { %v11_v5 = vpop.permute.xlu0 %10  }
  0x7d   :  { %v23_v6 = vpop.permute.xlu1 %22   ;;  %27 = vst.msk [vmem:[%s62_s1 + $0x1] ss:$4 sm:$0x3] %vm7_vm0, %v11_v5  }
  0x7e   :  { %29 = vst.msk [vmem:[%s62_s1 + $0x3] ss:$4 sm:$0x3] %vm7_vm0, %v23_v6  }
  0x80   :  { %v17_v7 = vpop.permute.xlu0 %16  }
  0x81   :  { %28 = vst.msk [vmem:[%s62_s1 + $0x2] ss:$4 sm:$0x3] %vm7_vm0, %v17_v7  }

// kernel: outclass_forward.2
= control target key start
LH: loop header
LB: loop body
LE: loop exit
PB: predicated region body
PF: predicated region fallthrough
CT: control target
= control target key end

     0   :  { %v69_v0 = vmov 0   ;;  %s105_s1 = inlined_call_operand.vmem [shape: f32[8,1], index: 1, kind: input, shape index: {}]   ;;  %s106_s2 = inlined_call_operand.vmem [shape: f32[8,1], index: 2, kind: input, shape index: {}]   ;;  %s107_s0 = inlined_call_operand.vmem [shape: f32[8,256], index: 0, kind: input, shape index: {}]   ;;  %s108_s3 = inlined_call_operand.vmem [shape: bf16[8,256], index: 3, kind: output, shape index: {}]  }
   0x1   :  { %64 = vset.pattern.permute.xlu0 %v69_v0  ;;  %v30_v1 = vld [vmem:[%s105_s1] sm:$0xff]  ;;  %v15_v4 = vld [vmem:[%s107_s0 + $0x8] sm:$0xff] }
   0x2   :  { %33 = vperm.xlu0 %64, %v30_v1   ;;  %v38_v2 = vld [vmem:[%s106_s2] sm:$0xff]  ;;  %v20_v6 = vmul.f32 1.442695, %v15_v4  ;;  %vm17_vm1 = vcmp.gt.f32.partialorder %v15_v4, 0.0 }
   0x3   :  { %v14_v3 = vld [vmem:[%s107_s0] sm:$0xff] }
   0x4   :  { %v18_v5 = vmul.f32 1.442695, %v14_v3  ;;  %vm16_vm0 = vcmp.gt.f32.partialorder %v14_v3, 0.0 }
   0x6   :  { %41 = vperm.xlu0 %64, %v38_v2   ;;  %65 = vpow2.f32 %v18_v5 }
   0x7   :  { %67 = vpow2.f32 %v20_v6 }
  0x10   :  { %v66_v7 = vpop.eup %65 }
  0x11   :  { %v68_v8 = vpop.eup %67  ;;  %v59_v9 = vadd.f32 -1.0, %v66_v7 }
  0x12   :  { %v60_v10 = vadd.f32 -1.0, %v68_v8 }
  0x13   :  { %v24_v11 = vmul.f32 1.6732632, %v59_v9 }
  0x14   :  { %v25_v12 = vmul.f32 1.6732632, %v60_v10 }
  0x15   :  { %v26_v13 = vsel %vm16_vm0, %v14_v3, %v24_v11 }
  0x16   :  { %v27_v14 = vsel %vm17_vm1, %v15_v4, %v25_v12  ;;  %v28_v15 = vmul.f32 1.050701, %v26_v13 }
  0x17   :  { %v29_v16 = vmul.f32 1.050701, %v27_v14 }
  0x81   :  { %v34_v17 = vpop.permute.xlu0 %33 }
  0x82   :  { %v36_v18 = vmul.f32 %v34_v17, %v28_v15  ;;  %v37_v19 = vmul.f32 %v34_v17, %v29_v16 }
  0x85   :  { %v42_v20 = vpop.permute.xlu0 %41 }
  0x86   :  { %v44_v21 = vadd.f32 %v42_v20, %v36_v18  ;;  %v45_v22 = vadd.f32 %v42_v20, %v37_v19 }
  0x88   :  { %v62_v23 = vpack.c.bf16 %v45_v22, %v44_v21 }
  0x8a   :  { %54 = vst [vmem:[%s108_s3] sm:$0xff] %v62_v23 }

// kernel: outclass_forward.3
= control target key start
LH: loop header
LB: loop body
LE: loop exit
PB: predicated region body
PF: predicated region fallthrough
CT: control target
= control target key end

     0   :  { %s807_s12 = smov 0   ;;  %s941_s0 = inlined_call_operand.vmem [shape: bf16[512,128], index: 0, kind: input, shape index: {}]   ;;  %s942_s1 = inlined_call_operand.vmem [shape: bf16[128,128], index: 1, kind: input, shape index: {}]   ;;  %s943_s2 = inlined_call_operand.vmem [shape: f32[1,128], index: 2, kind: input, shape index: {}]   ;;  %s944_s3 = inlined_call_operand.vmem [shape: f32[512,128], index: 3, kind: output, shape index: {}]  }
   0x1 LB: > { %s623_s13 = sadd.s32 4294967295, %s785_s12   ;;  %p627_p0 = scmp.ge.s32.totalorder %s785_s12, 1  ;;  %s785_s12 = sphi %s807_s12, %s13_s12  }
   0x2   : > { %p138_p1 = scmp.lt.s32.totalorder %s785_s12, 3 }
   0x4   : > { %p139_p2 = pnand %p627_p0, %p138_p1 }
   0x5   : > { %v755_v0 = vld [vmem:[%s942_s1] sm:$0xff] (!%p139_p2)   ;;  %s628_s16 = sshll.u32 (!%p139_p2), %s623_s13, 5  ;;  %v756_v1 = vld [vmem:[%s942_s1 + $0x8] sm:$0xff] (!%p139_p2)   ;;  %v757_v2 = vld [vmem:[%s942_s1 + $0x10] sm:$0xff] (!%p139_p2)  }
   0x6   : > { %142 = sbr.rel (%p139_p2) target bundleno = 280 (0x118), region = 32  ;;  %p163_p3 = scmp.lt.s32.totalorder (!%p139_p2), %s628_s16, 63  ;;  %683 = vmatprep.subr.bf16.mxu0 (!%p139_p2), %v755_v0  ;;  %731 = vmatprep.subr.bf16.mxu1 (!%p139_p2), %v755_v0  ;;  %v758_v3 = vld [vmem:[%s942_s1 + $0x18] sm:$0xff] (!%p139_p2)   ;;  %v759_v6 = vld [vmem:[%s942_s1 + $0x20] sm:$0xff] (!%p139_p2)   ;;  %v760_v7 = vld [vmem:[%s942_s1 + $0x28] sm:$0xff] (!%p139_p2)  }
   0x7   : > { %684 = vmatpush3.bf16.msra.mxu0 (!%p139_p2), %v755_v0  ;;  %739 = vmatpush3.bf16.msra.mxu1 (!%p139_p2), %v755_v0  ;;  %v761_v8 = vld [vmem:[%s942_s1 + $0x30] sm:$0xff] (!%p139_p2)   ;;  %v762_v9 = vld [vmem:[%s942_s1 + $0x38] sm:$0xff] (!%p139_p2)   ;;  %v867_v24 = vld [vmem:[%s943_s2] ss:$0 sm:$0xff] (!%p139_p2) }
   0x8   : > { %685 = vmatprep.subr.bf16.mxu0 (!%p139_p2), %v756_v1  ;;  %732 = vmatprep.subr.bf16.mxu1 (!%p139_p2), %v756_v1 }
   0xb   : > { %686 = vmatpush3.bf16.msra.mxu0 (!%p139_p2), %v756_v1  ;;  %740 = vmatpush3.bf16.msra.mxu1 (!%p139_p2), %v756_v1 }
   0xc   : > { %687 = vmatprep.subr.bf16.mxu0 (!%p139_p2), %v757_v2  ;;  %733 = vmatprep.subr.bf16.mxu1 (!%p139_p2), %v757_v2 }
   0xd   : > { %s946_s16 = smov (!%p163_p3, %s628_s16), 63 }
   0xe   : > { %s629_s21 = sshll.u32 %s946_s16, 2  ;;  %s631_s8 = sshll.u32 %s946_s16, 3 }
   0xf   : > { %s830_s24 = scalar_lea.vmem %s941_s0, %s629_s21  ;;  %688 = vmatpush3.bf16.msra.mxu0 %v757_v2  ;;  %741 = vmatpush3.bf16.msra.mxu1 %v757_v2  ;;  %s872_s14 = scalar_lea.vmem %s944_s3, %s631_s8 }
  0x10   : > { %v763_v4 = vld [vmem:[%s830_s24] sm:$0xff]   ;;  %689 = vmatprep.subr.bf16.mxu0 %v758_v3  ;;  %734 = vmatprep.subr.bf16.mxu1 %v758_v3  ;;  %v765_v10 = vld [vmem:[%s830_s24 + $0x8] sm:$0xff]   ;;  %v767_v12 = vld [vmem:[%s830_s24 + $0x10] sm:$0xff]  }
  0x11   : > { %v764_v5 = vld [vmem:[%s830_s24 + $0x40] sm:$0xff]   ;;  %699 = vmatprep.mubr.bf16.mxu0 %v763_v4  ;;  %v766_v11 = vld [vmem:[%s830_s24 + $0x48] sm:$0xff]   ;;  %v768_v13 = vld [vmem:[%s830_s24 + $0x50] sm:$0xff]  }
  0x12   : > { %715 = vmatprep.mubr.bf16.mxu1 %v764_v5  ;;  %v769_v14 = vld [vmem:[%s830_s24 + $0x18] sm:$0xff]   ;;  %v771_v16 = vld [vmem:[%s830_s24 + $0x20] sm:$0xff]   ;;  %v773_v18 = vld [vmem:[%s830_s24 + $0x28] sm:$0xff]  }
  0x13   : > { %690 = vmatpush3.bf16.msra.mxu0 %v758_v3  ;;  %742 = vmatpush3.bf16.msra.mxu1 %v758_v3  ;;  %v770_v15 = vld [vmem:[%s830_s24 + $0x58] sm:$0xff]   ;;  %v772_v17 = vld [vmem:[%s830_s24 + $0x60] sm:$0xff]   ;;  %v774_v19 = vld [vmem:[%s830_s24 + $0x68] sm:$0xff]  }
  0x14   : > { %691 = vmatprep.subr.bf16.mxu0 %v759_v6  ;;  %735 = vmatprep.subr.bf16.mxu1 %v759_v6  ;;  %v775_v20 = vld [vmem:[%s830_s24 + $0x30] sm:$0xff]   ;;  %v777_v22 = vld [vmem:[%s830_s24 + $0x38] sm:$0xff]  }
  0x15   : > { %v776_v21 = vld [vmem:[%s830_s24 + $0x70] sm:$0xff]   ;;  %v778_v23 = vld [vmem:[%s830_s24 + $0x78] sm:$0xff]  }
  0x17   : > { %692 = vmatpush3.bf16.msra.mxu0 %v759_v6  ;;  %743 = vmatpush3.bf16.msra.mxu1 %v759_v6 }
  0x18   : > { %693 = vmatprep.subr.bf16.mxu0 %v760_v7  ;;  %736 = vmatprep.subr.bf16.mxu1 %v760_v7 }
  0x1b   : > { %694 = vmatpush3.bf16.msra.mxu0 %v760_v7  ;;  %744 = vmatpush3.bf16.msra.mxu1 %v760_v7 }
  0x1c   : > { %695 = vmatprep.subr.bf16.mxu0 %v761_v8  ;;  %737 = vmatprep.subr.bf16.mxu1 %v761_v8 }
  0x1f   : > { %696 = vmatpush3.bf16.msra.mxu0 %v761_v8  ;;  %745 = vmatpush3.bf16.msra.mxu1 %v761_v8 }
  0x20   : > { %697 = vmatprep.subr.bf16.mxu0 %v762_v9  ;;  %738 = vmatprep.subr.bf16.mxu1 %v762_v9 }
  0x23   : > { %698 = vmatpush3.bf16.msra.mxu0 %v762_v9  ;;  %746 = vmatpush3.bf16.msra.mxu1 %v762_v9 }
  0x26   : > { %700 = vmatmul.mubr.bf16.vlgmr.msra.gmra.mrb[0].mxu0 %v765_v10  ;;  %716 = vmatmul.mubr.bf16.vlgmr.msra.gmra.mrb[0].mxu1 %v766_v11 }
  0x27   : > { %703 = vmatprep.mubr.bf16.mxu0 %v767_v12  ;;  %719 = vmatprep.mubr.bf16.mxu1 %v768_v13 }
  0x2e   : > { %704 = vmatmul.mubr.bf16.gmra.mrb[4].mxu0 %v769_v14  ;;  %720 = vmatmul.mubr.bf16.gmra.mrb[4].mxu1 %v770_v15 }
  0x2f   : > { %707 = vmatprep.mubr.bf16.mxu0 %v771_v16  ;;  %723 = vmatprep.mubr.bf16.mxu1 %v772_v17 }
  0x36   : > { %708 = vmatmul.mubr.bf16.gmra.mrb[8].mxu0 %v773_v18  ;;  %724 = vmatmul.mubr.bf16.gmra.mrb[8].mxu1 %v774_v19 }
  0x37   : > { %711 = vmatprep.mubr.bf16.mxu0 %v775_v20  ;;  %727 = vmatprep.mubr.bf16.mxu1 %v776_v21 }
  0x3e   : > { %712 = vmatmul.mubr.bf16.gmra.mrb[12].mxu0 %v777_v22  ;;  %728 = vmatmul.mubr.bf16.gmra.mrb[12].mxu1 %v778_v23 }
  0xf9   : > { %v701_v25 = vpop.f32.mrb[0].mxu0  ;;  %v717_v26 = vpop.f32.mrb[0].mxu1 }
  0xfa   : > { %v417_v27 = vadd.f32 %v701_v25, %v867_v24  ;;  %v481_v28 = vadd.f32 %v717_v26, %v867_v24  ;;  %v408_v29 = vpop.f32.mrb[1].mxu0  ;;  %v472_v30 = vpop.f32.mrb[1].mxu1 }
  0xfb   : > { %v409_v31 = vadd.f32 %v867_v24, %v408_v29  ;;  %v473_v32 = vadd.f32 %v867_v24, %v472_v30  ;;  %v702_v33 = vpop.f32.mrb[2].mxu0  ;;  %v718_v34 = vpop.f32.mrb[2].mxu1 }
  0xfc   : > { %537 = vst [vmem:[%s872_s14 + $0x10] sm:$0xff] %v417_v27  ;;  %553 = vst [vmem:[%s872_s14 + $0x90] sm:$0xff] %v481_v28  ;;  %v420_v35 = vadd.f32 %v702_v33, %v867_v24  ;;  %v484_v36 = vadd.f32 %v718_v34, %v867_v24  ;;  %v411_v37 = vpop.f32.mrb[3].mxu0  ;;  %v475_v38 = vpop.f32.mrb[3].mxu1 }
  0xfd   : > { %535 = vst [vmem:[%s872_s14] sm:$0xff] %v409_v31  ;;  %551 = vst [vmem:[%s872_s14 + $0x80] sm:$0xff] %v473_v32  ;;  %v412_v39 = vadd.f32 %v867_v24, %v411_v37  ;;  %v476_v40 = vadd.f32 %v867_v24, %v475_v38 }
  0xfe   : > { %538 = vst [vmem:[%s872_s14 + $0x18] sm:$0xff] %v420_v35  ;;  %554 = vst [vmem:[%s872_s14 + $0x98] sm:$0xff] %v484_v36 }
  0xff   : > { %536 = vst [vmem:[%s872_s14 + $0x8] sm:$0xff] %v412_v39  ;;  %552 = vst [vmem:[%s872_s14 + $0x88] sm:$0xff] %v476_v40 }
 0x101   : > { %v705_v41 = vpop.f32.mrb[4].mxu0  ;;  %v721_v42 = vpop.f32.mrb[4].mxu1 }
 0x102   : > { %v433_v43 = vadd.f32 %v705_v41, %v867_v24  ;;  %v497_v44 = vadd.f32 %v721_v42, %v867_v24  ;;  %v424_v45 = vpop.f32.mrb[5].mxu0  ;;  %v488_v46 = vpop.f32.mrb[5].mxu1 }
 0x103   : > { %v425_v47 = vadd.f32 %v867_v24, %v424_v45  ;;  %v489_v48 = vadd.f32 %v867_v24, %v488_v46  ;;  %v706_v49 = vpop.f32.mrb[6].mxu0  ;;  %v722_v50 = vpop.f32.mrb[6].mxu1 }
 0x104   : > { %541 = vst [vmem:[%s872_s14 + $0x30] sm:$0xff] %v433_v43  ;;  %557 = vst [vmem:[%s872_s14 + $0xb0] sm:$0xff] %v497_v44  ;;  %v436_v51 = vadd.f32 %v706_v49, %v867_v24  ;;  %v500_v52 = vadd.f32 %v722_v50, %v867_v24  ;;  %v427_v53 = vpop.f32.mrb[7].mxu0  ;;  %v491_v54 = vpop.f32.mrb[7].mxu1 }
 0x105   : > { %539 = vst [vmem:[%s872_s14 + $0x20] sm:$0xff] %v425_v47  ;;  %555 = vst [vmem:[%s872_s14 + $0xa0] sm:$0xff] %v489_v48  ;;  %v428_v55 = vadd.f32 %v867_v24, %v427_v53  ;;  %v492_v56 = vadd.f32 %v867_v24, %v491_v54 }
 0x106   : > { %542 = vst [vmem:[%s872_s14 + $0x38] sm:$0xff] %v436_v51  ;;  %558 = vst [vmem:[%s872_s14 + $0xb8] sm:$0xff] %v500_v52 }
 0x107   : > { %540 = vst [vmem:[%s872_s14 + $0x28] sm:$0xff] %v428_v55  ;;  %556 = vst [vmem:[%s872_s14 + $0xa8] sm:$0xff] %v492_v56 }
 0x109   : > { %v709_v57 = vpop.f32.mrb[8].mxu0  ;;  %v725_v58 = vpop.f32.mrb[8].mxu1 }
 0x10a   : > { %v449_v59 = vadd.f32 %v709_v57, %v867_v24  ;;  %v513_v60 = vadd.f32 %v725_v58, %v867_v24  ;;  %v440_v61 = vpop.f32.mrb[9].mxu0  ;;  %v504_v62 = vpop.f32.mrb[9].mxu1 }
 0x10b   : > { %v441_v63 = vadd.f32 %v867_v24, %v440_v61  ;;  %v505_v0 = vadd.f32 %v867_v24, %v504_v62  ;;  %v710_v1 = vpop.f32.mrb[10].mxu0  ;;  %v726_v2 = vpop.f32.mrb[10].mxu1 }
 0x10c   : > { %545 = vst [vmem:[%s872_s14 + $0x50] sm:$0xff] %v449_v59  ;;  %561 = vst [vmem:[%s872_s14 + $0xd0] sm:$0xff] %v513_v60  ;;  %v452_v3 = vadd.f32 %v710_v1, %v867_v24  ;;  %v516_v4 = vadd.f32 %v726_v2, %v867_v24  ;;  %v443_v5 = vpop.f32.mrb[11].mxu0  ;;  %v507_v6 = vpop.f32.mrb[11].mxu1 }
 0x10d   : > { %543 = vst [vmem:[%s872_s14 + $0x40] sm:$0xff] %v441_v63  ;;  %559 = vst [vmem:[%s872_s14 + $0xc0] sm:$0xff] %v505_v0  ;;  %v444_v7 = vadd.f32 %v867_v24, %v443_v5  ;;  %v508_v8 = vadd.f32 %v867_v24, %v507_v6 }
 0x10e   : > { %546 = vst [vmem:[%s872_s14 + $0x58] sm:$0xff] %v452_v3  ;;  %562 = vst [vmem:[%s872_s14 + $0xd8] sm:$0xff] %v516_v4 }
 0x10f   : > { %544 = vst [vmem:[%s872_s14 + $0x48] sm:$0xff] %v444_v7  ;;  %560 = vst [vmem:[%s872_s14 + $0xc8] sm:$0xff] %v508_v8 }
 0x111   : > { %v713_v9 = vpop.f32.mrb[12].mxu0  ;;  %v729_v10 = vpop.f32.mrb[12].mxu1 }
 0x112   : > { %v465_v11 = vadd.f32 %v713_v9, %v867_v24  ;;  %v529_v12 = vadd.f32 %v729_v10, %v867_v24  ;;  %v456_v13 = vpop.f32.mrb[13].mxu0  ;;  %v520_v14 = vpop.f32.mrb[13].mxu1 }
 0x113   : > { %v457_v15 = vadd.f32 %v867_v24, %v456_v13  ;;  %v521_v16 = vadd.f32 %v867_v24, %v520_v14  ;;  %v714_v17 = vpop.f32.mrb[14].mxu0  ;;  %v730_v18 = vpop.f32.mrb[14].mxu1 }
 0x114   : > { %549 = vst [vmem:[%s872_s14 + $0x70] sm:$0xff] %v465_v11  ;;  %565 = vst [vmem:[%s872_s14 + $0xf0] sm:$0xff] %v529_v12  ;;  %v468_v19 = vadd.f32 %v714_v17, %v867_v24  ;;  %v532_v20 = vadd.f32 %v730_v18, %v867_v24  ;;  %v459_v21 = vpop.f32.mrb[15].mxu0  ;;  %v523_v22 = vpop.f32.mrb[15].mxu1 }
 0x115   : > { %547 = vst [vmem:[%s872_s14 + $0x60] sm:$0xff] %v457_v15  ;;  %563 = vst [vmem:[%s872_s14 + $0xe0] sm:$0xff] %v521_v16  ;;  %v460_v23 = vadd.f32 %v867_v24, %v459_v21  ;;  %v524_v25 = vadd.f32 %v867_v24, %v523_v22 }
 0x116   : > { %550 = vst [vmem:[%s872_s14 + $0x78] sm:$0xff] %v468_v19  ;;  %566 = vst [vmem:[%s872_s14 + $0xf8] sm:$0xff] %v532_v20 }
 0x117   : > { %548 = vst [vmem:[%s872_s14 + $0x68] sm:$0xff] %v460_v23  ;;  %564 = vst [vmem:[%s872_s14 + $0xe8] sm:$0xff] %v524_v25 }
 0x118 PF: > { %s13_s12 = sadd.s32 1, %s785_s12  }
 0x119   : > { %p10_p4 = scmp.ge.s32.totalorder %s13_s12, 4  }
 0x11b   :  { %12 = sbr.rel (!%p10_p4) target bundleno = 1 (0x1), region = 62 }

</bundles_post_ra>
